<compile_context>
chip_gen: v7x
topology: tpu7x:2x2x1
jax: 0.10.0
libtpu: 0.0.40
codegen_flags: <defaults>
</compile_context>

<pallas_src>
import jax
import jax.numpy as jnp
from jax.experimental import pallas as pl
from jax.experimental.pallas import tpu as pltpu


LANE = 128      # lane width: pad all feature dims to a multiple of this
SUBLANE = 8     # sublane width: pad the batch dim to a multiple of this


def _round_up(x, m):
    return ((x + m - 1) // m) * m


# ----------------------------- fused kernel --------------------------------


def _make_fused_densenet_kernel(n_layers):
    """Build a kernel: refs = (x, w0, b0, w1, b1, ..., w_last, out).

    The layer chain is statically unrolled; the running activation never
    leaves VMEM/vregs. Scales are pre-folded into the (bf16) weights, so each
    hidden layer is bf16 MXU-dot -> f32 bias-add + relu -> bf16 recast; the
    last layer is a bare dot with an f32 result.
    """

    def kernel(*refs):
        x_ref, o_ref = refs[0], refs[-1]
        p = refs[1:-1]
        act = x_ref[...]                        # bf16 (tile_m, in_pad)
        j = 0
        out = None
        for i in range(n_layers):
            w = p[j][...]                       # bf16 (k_pad, m_pad)
            j += 1
            y = jnp.dot(act, w, preferred_element_type=jnp.float32)
            if i < n_layers - 1:
                b = p[j][...]                   # f32 (1, m_pad), broadcasts
                j += 1
                # f32 epilogue (v5e-friendly); recast to bf16 for next MXU op.
                act = jnp.maximum(y + b, 0.0).astype(jnp.bfloat16)
            else:
                out = y
        o_ref[...] = out.astype(o_ref.dtype)

    return kernel


# ------------------------------- wrappers ----------------------------------


def prepare_fused_params(params):
    """Pad feature dims to multiples of 128, fold the per-layer scale
    (1/sqrt(in_dim) hidden, 1/in_dim last) into the weights, cast weights to
    bf16 (biases stay f32 for the f32 epilogue). Padded rows/cols/lanes are
    zero, so padded activation lanes stay exactly zero through every layer."""
    n_layers = len(params)
    fused = []
    for i, (w, b) in enumerate(params):
        in_dim, out_dim = w.shape
        last = (i == n_layers - 1)
        scale = (1.0 / in_dim) if last else (1.0 / (in_dim ** 0.5))
        in_pad = _round_up(in_dim, LANE)
        out_pad = _round_up(out_dim, LANE)
        w_pad = (
            jnp.zeros((in_pad, out_pad), jnp.float32)
            .at[:in_dim, :out_dim]
            .set(w.astype(jnp.float32) * scale)
            .astype(jnp.bfloat16)
        )
        fused.append(w_pad)
        if not last:
            b_pad = (
                jnp.zeros((1, out_pad), jnp.float32)
                .at[0, :out_dim]
                .set(b.astype(jnp.float32))
            )
            fused.append(b_pad)
    return fused


def densenet_forward(params, x, *, batch_tile=512):
    """Full DenseNet forward as one fused pallas_call."""
    x2d = x.reshape(x.shape[0], -1)            # torch.flatten(x, 1)
    n, in_dim = x2d.shape
    n_layers = len(params)
    out_dim = params[-1][0].shape[1]

    fused = prepare_fused_params(params)

    in_pad = _round_up(in_dim, LANE)
    out_pad = _round_up(out_dim, LANE)

    # Batch padding: only to the 8-row sublane boundary (independent of the
    # tile size); skip the pad copy entirely when shapes already align.
    n_pad = _round_up(n, SUBLANE)
    if n_pad == n and in_pad == in_dim:
        x_in = x2d.astype(jnp.bfloat16)
    else:
        x_in = (
            jnp.zeros((n_pad, in_pad), jnp.bfloat16)
            .at[:n, :in_dim]
            .set(x2d.astype(jnp.bfloat16))
        )

    # Batch tiling: multiple of 8, at most `batch_tile` rows, and capped at
    # ~half the (padded) batch so large batches get >= 2 grid steps (v7x: both
    # TensorCores via "parallel"; harmless on single-TC v5e/v6e).
    batch_tile = _round_up(max(int(batch_tile), SUBLANE), SUBLANE)
    two_step = _round_up(pl.cdiv(n_pad, 2), SUBLANE)
    tile_m = min(batch_tile, max(SUBLANE, two_step), n_pad)
    grid = (pl.cdiv(n_pad, tile_m),)

    in_specs = [pl.BlockSpec((tile_m, in_pad), lambda i: (i, 0))]
    for arr in fused:  # weights/biases: whole-array, VMEM-resident blocks
        in_specs.append(pl.BlockSpec(arr.shape, lambda i: (0, 0)))
    out_specs = pl.BlockSpec((tile_m, out_pad), lambda i: (i, 0))

    # Advisory cost estimate for XLA scheduling around the custom call.
    dims = [params[0][0].shape[0]] + [w.shape[1] for (w, _b) in params]
    dims_pad = [_round_up(d, LANE) for d in dims]
    flops = 2 * n_pad * sum(dims_pad[i] * dims_pad[i + 1] for i in range(n_layers))
    bytes_accessed = (
        x_in.size * x_in.dtype.itemsize
        + sum(a.size * a.dtype.itemsize for a in fused)
        + n_pad * out_pad * 4
    )
    cost = pl.CostEstimate(
        flops=int(flops), transcendentals=0, bytes_accessed=int(bytes_accessed)
    )

    kernel = _make_fused_densenet_kernel(n_layers)
    out_padded = pl.pallas_call(
        kernel,
        out_shape=jax.ShapeDtypeStruct((n_pad, out_pad), jnp.float32),
        grid=grid,
        in_specs=in_specs,
        out_specs=out_specs,
        compiler_params=pltpu.CompilerParams(
            dimension_semantics=("parallel",),
            # Explicit budget: safe on v5e/v6e/v7x; actual use (bf16 x tiles,
            # tiny weight slabs, double buffers) is only a few MiB.
            vmem_limit_bytes=32 * 1024 * 1024,
        ),
        cost_estimate=cost,
    )(x_in, *fused)

    return out_padded[:n, :out_dim]


def init_densenet_params(key, n_layers, input_dim, h, out_dim):
    """Deterministic parameter init matching the torch.randn init shapes."""
    dims = [input_dim] + [h] * (n_layers - 1) + [out_dim]
    params = []
    for i in range(n_layers):
        key, kw, kb = jax.random.split(key, 3)
        w = jax.random.normal(kw, (dims[i], dims[i + 1]), dtype=jnp.float32)
        b = jax.random.normal(kb, (dims[i + 1],), dtype=jnp.float32)
        params.append((w, b))
    return params


# --------------------------- pure-JAX reference -----------------------------


def densenet_reference(params, x):
    y = x.reshape(x.shape[0], -1)
    n_layers = len(params)
    for i, (w, b) in enumerate(params):
        y = y.reshape(y.shape[0], -1)
        d = y.shape[1]
        if i == n_layers - 1:
            y = (y @ w) / d
        else:
            y = jax.nn.relu((y @ w) / (d ** 0.5) + b)
    return y


# --------------------------------- main -------------------------------------


if __name__ == "__main__":
    # Small shapes consistent with the module: NCHW input, flattened inside.
    batch, channels, spatial = 2, 4, 16
    input_dim = channels * spatial * spatial   # 1024
    n_layers, hidden, out_dim = 3, 32, 8

    key = jax.random.PRNGKey(0)
    key, kx = jax.random.split(key)
    x = jax.random.normal(kx, (batch, channels, spatial, spatial), dtype=jnp.float32)

    params = init_densenet_params(key, n_layers, input_dim, hidden, out_dim)

    out = densenet_forward(params, x)
    out = jax.block_until_ready(out)

    ref = densenet_reference(params, x)
    assert out.shape == (batch, out_dim)
    # bf16 matmul inputs -> loosened tolerance vs. the f32 reference.
    assert jnp.allclose(out, ref, atol=2e-2, rtol=2e-2), "mismatch vs JAX reference"

    print("KERNEL_OK")
</pallas_src>

<mosaic_0001>
module attributes {stable_mosaic.version = 11 : i64} {
  func.func @kernel(%arg0: i32, %arg1: memref<8x1024xbf16, #tpu.memory_space<vmem>>, %arg2: memref<1024x128xbf16, #tpu.memory_space<vmem>>, %arg3: memref<1x128xf32, #tpu.memory_space<vmem>>, %arg4: memref<128x128xbf16, #tpu.memory_space<vmem>>, %arg5: memref<1x128xf32, #tpu.memory_space<vmem>>, %arg6: memref<128x128xbf16, #tpu.memory_space<vmem>>, %arg7: memref<8x128xf32, #tpu.memory_space<vmem>>) attributes {dimension_semantics = [#tpu.dimension_semantics<parallel>], iteration_bounds = array<i64: 1>, scalar_prefetch = 0 : i64, scratch_operands = 0 : i64, tpu.core_type = #tpu.core_type<tc>, window_params = [{transform_indices = @transform_0, window_bounds = array<i64: 8, 1024>}, {pipeline_mode = #tpu.pipeline_mode<synchronous>, transform_indices = @transform_1, window_bounds = array<i64: 1024, 128>}, {pipeline_mode = #tpu.pipeline_mode<synchronous>, transform_indices = @transform_2, window_bounds = array<i64: 1, 128>}, {pipeline_mode = #tpu.pipeline_mode<synchronous>, transform_indices = @transform_3, window_bounds = array<i64: 128, 128>}, {pipeline_mode = #tpu.pipeline_mode<synchronous>, transform_indices = @transform_4, window_bounds = array<i64: 1, 128>}, {pipeline_mode = #tpu.pipeline_mode<synchronous>, transform_indices = @transform_5, window_bounds = array<i64: 128, 128>}, {transform_indices = @transform_6, window_bounds = array<i64: 8, 128>}]} {
    %c0 = arith.constant 0 : index
    %c0_0 = arith.constant 0 : index
    %0 = vector.load %arg1[%c0, %c0_0] : memref<8x1024xbf16, #tpu.memory_space<vmem>>, vector<8x1024xbf16>
    %c0_1 = arith.constant 0 : index
    %c0_2 = arith.constant 0 : index
    %1 = vector.load %arg2[%c0_1, %c0_2] : memref<1024x128xbf16, #tpu.memory_space<vmem>>, vector<1024x128xbf16>
    %cst = arith.constant dense<0.000000e+00> : vector<8x128xf32>
    %2 = tpu.matmul %0, %1, %cst {dimension_numbers = #tpu.dot_dimension_numbers<[1], [0], [0], [1], [0, 0, 1, 1], [], []>} : vector<8x1024xbf16>, vector<1024x128xbf16>, vector<8x128xf32> -> vector<8x128xf32>
    %c0_3 = arith.constant 0 : index
    %c0_4 = arith.constant 0 : index
    %3 = vector.load %arg3[%c0_3, %c0_4] : memref<1x128xf32, #tpu.memory_space<vmem>>, vector<1x128xf32>
    %4 = vector.broadcast %3 : vector<1x128xf32> to vector<8x128xf32>
    %5 = arith.addf %2, %4 : vector<8x128xf32>
    %cst_5 = arith.constant 0.000000e+00 : f32
    %6 = vector.broadcast %cst_5 : f32 to vector<8x128xf32>
    %7 = arith.maximumf %5, %6 : vector<8x128xf32>
    %8 = arith.truncf %7 : vector<8x128xf32> to vector<8x128xbf16>
    %c0_6 = arith.constant 0 : index
    %c0_7 = arith.constant 0 : index
    %9 = vector.load %arg4[%c0_6, %c0_7] : memref<128x128xbf16, #tpu.memory_space<vmem>>, vector<128x128xbf16>
    %cst_8 = arith.constant dense<0.000000e+00> : vector<8x128xf32>
    %10 = tpu.matmul %8, %9, %cst_8 {dimension_numbers = #tpu.dot_dimension_numbers<[1], [0], [0], [1], [0, 0, 1, 1], [], []>} : vector<8x128xbf16>, vector<128x128xbf16>, vector<8x128xf32> -> vector<8x128xf32>
    %c0_9 = arith.constant 0 : index
    %c0_10 = arith.constant 0 : index
    %11 = vector.load %arg5[%c0_9, %c0_10] : memref<1x128xf32, #tpu.memory_space<vmem>>, vector<1x128xf32>
    %12 = vector.broadcast %11 : vector<1x128xf32> to vector<8x128xf32>
    %13 = arith.addf %10, %12 : vector<8x128xf32>
    %cst_11 = arith.constant 0.000000e+00 : f32
    %14 = vector.broadcast %cst_11 : f32 to vector<8x128xf32>
    %15 = arith.maximumf %13, %14 : vector<8x128xf32>
    %16 = arith.truncf %15 : vector<8x128xf32> to vector<8x128xbf16>
    %c0_12 = arith.constant 0 : index
    %c0_13 = arith.constant 0 : index
    %17 = vector.load %arg6[%c0_12, %c0_13] : memref<128x128xbf16, #tpu.memory_space<vmem>>, vector<128x128xbf16>
    %cst_14 = arith.constant dense<0.000000e+00> : vector<8x128xf32>
    %18 = tpu.matmul %16, %17, %cst_14 {dimension_numbers = #tpu.dot_dimension_numbers<[1], [0], [0], [1], [0, 0, 1, 1], [], []>} : vector<8x128xbf16>, vector<128x128xbf16>, vector<8x128xf32> -> vector<8x128xf32>
    %c0_15 = arith.constant 0 : index
    %c0_16 = arith.constant 0 : index
    %19 = vector.load %arg7[%c0_15, %c0_16] : memref<8x128xf32, #tpu.memory_space<vmem>>, vector<8x128xf32>
    tpu.vector_store %arg7[%c0_15, %c0_16], %18 {strides = array<i32>} : memref<8x128xf32, #tpu.memory_space<vmem>>, vector<8x128xf32>,
    return
  }
  func.func @transform_0(%arg0: i32) -> (i32, i32) {
    %c0_i32 = arith.constant 0 : i32
    %c0_i32_0 = arith.constant 0 : i32
    return %arg0, %c0_i32 : i32, i32
  }
  func.func @transform_1(%arg0: i32) -> (i32, i32) {
    %c0_i32 = arith.constant 0 : i32
    %c0_i32_0 = arith.constant 0 : i32
    %c0_i32_1 = arith.constant 0 : i32
    return %c0_i32, %c0_i32_0 : i32, i32
  }
  func.func @transform_2(%arg0: i32) -> (i32, i32) {
    %c0_i32 = arith.constant 0 : i32
    %c0_i32_0 = arith.constant 0 : i32
    %c0_i32_1 = arith.constant 0 : i32
    return %c0_i32, %c0_i32_0 : i32, i32
  }
  func.func @transform_3(%arg0: i32) -> (i32, i32) {
    %c0_i32 = arith.constant 0 : i32
    %c0_i32_0 = arith.constant 0 : i32
    %c0_i32_1 = arith.constant 0 : i32
    return %c0_i32, %c0_i32_0 : i32, i32
  }
  func.func @transform_4(%arg0: i32) -> (i32, i32) {
    %c0_i32 = arith.constant 0 : i32
    %c0_i32_0 = arith.constant 0 : i32
    %c0_i32_1 = arith.constant 0 : i32
    return %c0_i32, %c0_i32_0 : i32, i32
  }
  func.func @transform_5(%arg0: i32) -> (i32, i32) {
    %c0_i32 = arith.constant 0 : i32
    %c0_i32_0 = arith.constant 0 : i32
    %c0_i32_1 = arith.constant 0 : i32
    return %c0_i32, %c0_i32_0 : i32, i32
  }
  func.func @transform_6(%arg0: i32) -> (i32, i32) {
    %c0_i32 = arith.constant 0 : i32
    %c0_i32_0 = arith.constant 0 : i32
    return %arg0, %c0_i32 : i32, i32
  }
}

</mosaic_0001>

<bundles_post_ra>
// kernel: tpu_custom_call.1
= control target key start
LH: loop header
LB: loop body
LE: loop exit
PB: predicated region body
PF: predicated region fallthrough
CT: control target
= control target key end

     0   :  { %11 = vsyncpa [#allocation3], 0  ;;  %s1614_s0 = inlined_call_operand.hbm [shape: bf16[8,1024], index: 0, kind: input, shape index: {}]   ;;  %s1615_s1 = inlined_call_operand.hbm [shape: bf16[1024,128], index: 1, kind: input, shape index: {}]   ;;  %s1616_s2 = inlined_call_operand.vmem [shape: f32[1,128], index: 2, kind: input, shape index: {}]   ;;  %s1617_s3 = inlined_call_operand.hbm [shape: bf16[128,128], index: 3, kind: input, shape index: {}]   ;;  %s1618_s4 = inlined_call_operand.vmem [shape: f32[1,128], index: 4, kind: input, shape index: {}]   ;;  %s1619_s5 = inlined_call_operand.hbm [shape: bf16[128,128], index: 5, kind: input, shape index: {}]   ;;  %s1620_s6 = inlined_call_operand.hbm [shape: f32[8,128], index: 6, kind: output, shape index: {}]  }
   0x1   :  { %12 = vsyncpa [#allocation6], 0 }
   0x2   :  { %13 = vsyncpa [#allocation9], 0 }
   0x3   :  { %14 = vsyncpa [#allocation4], 0  ;;  %s1477_s21 = smov [#allocation5]   ;;  %s1359_s25 = scalar_lea.hbm %s1615_s1, 8192 }
   0x4   :  { %s30_s22 = sshll.u32 %s1477_s21, 4  ;;  %p1360_p0 = scmp.ne.s32.totalorder %s1615_s1, %s1359_s25  ;;  %s31_s22 = int_to_ptr.vmem [resolvable:$true] %s30_s22 }
   0x5   :  { %p1363_p1 = scmp.lt.u32.totalorder %s1359_s25, %s1615_s1 }
   0x7   :  { %p1365_p2 = pnand %p1363_p1, %p1360_p0 }
   0x9   :  { %1368 = shalt.err (!%p1365_p2)
}
   0xa   :  { %s1369_s30 = scalar_lea.vmem %s31_s22, 8192  ;;  %p1374_p4 = scmp.lt.s32.totalorder %s31_s22, %s31_s22 }
   0xb   :  { %p1370_p3 = scmp.ne.s32.totalorder %s31_s22, %s1369_s30  ;;  %p1375_p5 = scmp.lt.s32.totalorder %s1369_s30, %s1369_s30 }
   0xd   :  { %p1376_p6 = por %p1375_p5, %p1374_p4 }
   0xf   :  { %p1377_p7 = pnand %p1376_p6, %p1370_p3 }
  0x11   :  { %1380 = shalt.err (!%p1377_p7)
}
  0x12   :  { %s1478_s7 = smov 64   ;;  %s1479_s8 = smov 4  }
  0x13   :  { %36 = dma.hbm_to_vmem [thread:$0]  %s1615_s1, 8192, %s31_s22, [#allocation6], %s1478_s7, %s1478_s7, %s1479_s8  }
  0x14   :  { %s1480_s11 = smov [#allocation2]   ;;  %s1481_s13 = smov [#allocation7]  }
  0x15   :  { %s21_s12 = sshll.u32 %s1480_s11, 4  ;;  %s44_s14 = sshll.u32 %s1481_s13, 4  ;;  %s22_s12 = int_to_ptr.vmem [resolvable:$true] %s21_s12  ;;  %s45_s14 = int_to_ptr.vmem [resolvable:$true] %s44_s14 }
  0x16   :  { %s1381_s17 = scalar_lea.hbm %s1614_s0, 512 }
  0x17   :  { %p1382_p8 = scmp.ne.s32.totalorder %s1614_s0, %s1381_s17  ;;  %p1385_p9 = scmp.lt.u32.totalorder %s1381_s17, %s1614_s0 }
  0x19   :  { %p1387_p10 = pnand %p1385_p9, %p1382_p8 }
  0x1b   :  { %1390 = shalt.err (!%p1387_p10)
}
  0x1c   :  { %s1391_s1 = scalar_lea.vmem %s22_s12, 512  ;;  %p1396_p12 = scmp.lt.s32.totalorder %s22_s12, %s22_s12 }
  0x1d   :  { %p1392_p11 = scmp.ne.s32.totalorder %s22_s12, %s1391_s1  ;;  %p1397_p13 = scmp.lt.s32.totalorder %s1391_s1, %s1391_s1 }
  0x1f   :  { %p1398_p0 = por %p1397_p13, %p1396_p12 }
  0x21   :  { %p1399_p1 = pnand %p1398_p0, %p1392_p11 }
  0x23   :  { %1402 = shalt.err (!%p1399_p1)
}
  0x24   :  { %24 = dma.hbm_to_vmem [thread:$0]  %s1614_s0, 512, %s22_s12, [#allocation3]  }
  0x25   :  { %s1403_s26 = scalar_lea.hbm %s1617_s3, 1024 }
  0x26   :  { %p1404_p2 = scmp.ne.s32.totalorder %s1617_s3, %s1403_s26  ;;  %p1407_p3 = scmp.lt.u32.totalorder %s1403_s26, %s1617_s3 }
  0x28   :  { %p1409_p4 = pnand %p1407_p3, %p1404_p2 }
  0x2a   :  { %1412 = shalt.err (!%p1409_p4)
}
  0x2b   :  { %s1413_s9 = scalar_lea.vmem %s45_s14, 1024  ;;  %p1418_p6 = scmp.lt.s32.totalorder %s45_s14, %s45_s14 }
  0x2c   :  { %p1414_p5 = scmp.ne.s32.totalorder %s45_s14, %s1413_s9  ;;  %p1419_p7 = scmp.lt.s32.totalorder %s1413_s9, %s1413_s9 }
  0x2e   :  { %p1420_p8 = por %p1419_p7, %p1418_p6 }
  0x30   :  { %p1421_p9 = pnand %p1420_p8, %p1414_p5 }
  0x32   :  { %1424 = shalt.err (!%p1421_p9)
}
  0x33   :  { %50 = dma.hbm_to_vmem [thread:$0]  %s1617_s3, 1024, %s45_s14, [#allocation6], %s1478_s7, %s1478_s7, %s1479_s8  }
  0x34   :  { %s1482_s11 = smov [#allocation8]   ;;  %s1425_s16 = scalar_lea.hbm %s1619_s5, 1024 }
  0x35   :  { %s58_s12 = sshll.u32 %s1482_s11, 4  ;;  %p1426_p10 = scmp.ne.s32.totalorder %s1619_s5, %s1425_s16  ;;  %s59_s12 = int_to_ptr.vmem [resolvable:$true] %s58_s12 }
  0x36   :  { %p1429_p11 = scmp.lt.u32.totalorder %s1425_s16, %s1619_s5 }
  0x38   :  { %p1431_p12 = pnand %p1429_p11, %p1426_p10 }
  0x3a   :  { %1434 = shalt.err (!%p1431_p12)
}
  0x3b   :  { %s1435_s21 = scalar_lea.vmem %s59_s12, 1024  ;;  %p1440_p0 = scmp.lt.s32.totalorder %s59_s12, %s59_s12 }
  0x3c   :  { %p1436_p13 = scmp.ne.s32.totalorder %s59_s12, %s1435_s21  ;;  %p1441_p1 = scmp.lt.s32.totalorder %s1435_s21, %s1435_s21 }
  0x3e   :  { %p1442_p2 = por %p1441_p1, %p1440_p0 }
  0x40   :  { %p1443_p3 = pnand %p1442_p2, %p1436_p13 }
  0x42   :  { %1446 = shalt.err (!%p1443_p3)
}
  0x43   :  { %64 = dma.hbm_to_vmem [thread:$0]  %s1619_s5, 1024, %s59_s12, [#allocation9], %s1478_s7, %s1478_s7, %s1479_s8  }
  0x44   :  { %1469 = dma.done.wait [#allocation3], 512  }
  0x45   :  { %1470 = vsyncadd [#allocation3], 4294966784 }
  0x46   :  { %1471 = dma.done.wait [#allocation6], 9216  }
  0x47   :  { %1472 = vsyncadd [#allocation6], 4294958080 }
  0x48   :  { %1473 = dma.done.wait [#allocation9], 1024  }
  0x49   :  { %1474 = vsyncadd [#allocation9], 4294966272  ;;  %v1271_v0 = vld [vmem:[#allocation5 + $0x40] sm:$0xff]   ;;  %v1275_v4 = vld [vmem:[#allocation5 + $0x48] sm:$0xff]   ;;  %vm1484_vm0 = vmmov 0   ;;  %s1485_s1 = smov [#allocation10]  }
  0x4a   :  { %v1272_v1 = vld [vmem:[#allocation5 + $0xc0] sm:$0xff]   ;;  %1116 = vmatprep.subr.bf16.mxu0 %v1271_v0  ;;  %v1276_v5 = vld [vmem:[#allocation5 + $0xc8] sm:$0xff]   ;;  %v1279_v8 = vld [vmem:[#allocation5 + $0x50] sm:$0xff]   ;;  %s1015_s22 = sshll.u32 %s1485_s1, 4  ;;  %s1016_s22 = int_to_ptr.vmem [resolvable:$true] %s1015_s22 }
  0x4b   :  { %v1273_v2 = vld [vmem:[#allocation5] sm:$0xff]   ;;  %1138 = vmatprep.subr.bf16.mxu1 %v1272_v1  ;;  %v1277_v6 = vld [vmem:[#allocation5 + $0x8] sm:$0xff]   ;;  %v1280_v9 = vld [vmem:[#allocation5 + $0xd0] sm:$0xff]   ;;  %s1447_s23 = scalar_lea.vmem %s1016_s22, 128  ;;  %p1452_p5 = scmp.lt.s32.totalorder %s1016_s22, %s1016_s22 }
  0x4c   :  { %v1274_v3 = vld [vmem:[#allocation5 + $0x80] sm:$0xff]   ;;  %1117 = vmatpush3.bf16.msra.mxu0 %v1273_v2  ;;  %v1278_v7 = vld [vmem:[#allocation5 + $0x88] sm:$0xff]   ;;  %v1281_v10 = vld [vmem:[#allocation5 + $0x10] sm:$0xff]   ;;  %p1448_p4 = scmp.ne.s32.totalorder %s1016_s22, %s1447_s23  ;;  %p1453_p6 = scmp.lt.s32.totalorder %s1447_s23, %s1447_s23 }
  0x4d   :  { %1139 = vmatpush3.bf16.msra.mxu1 %v1274_v3  ;;  %1118 = vmatprep.subr.bf16.mxu0 %v1275_v4  ;;  %v1282_v11 = vld [vmem:[#allocation5 + $0x90] sm:$0xff]   ;;  %v1283_v12 = vld [vmem:[#allocation5 + $0x58] sm:$0xff]   ;;  %v1287_v16 = vld [vmem:[#allocation5 + $0x60] sm:$0xff]  }
  0x4e   :  { %1140 = vmatprep.subr.bf16.mxu1 %v1276_v5  ;;  %v1284_v13 = vld [vmem:[#allocation5 + $0xd8] sm:$0xff]   ;;  %v1288_v17 = vld [vmem:[#allocation5 + $0xe0] sm:$0xff]   ;;  %v1291_v20 = vld [vmem:[#allocation5 + $0x68] sm:$0xff]   ;;  %p1454_p7 = por %p1453_p6, %p1452_p5 }
  0x4f   :  { %v1285_v14 = vld [vmem:[#allocation5 + $0x18] sm:$0xff]   ;;  %v1289_v18 = vld [vmem:[#allocation5 + $0x20] sm:$0xff]   ;;  %v1292_v21 = vld [vmem:[#allocation5 + $0xe8] sm:$0xff]  }
  0x50   :  { %1119 = vmatpush3.bf16.msra.mxu0 %v1277_v6  ;;  %v1286_v15 = vld [vmem:[#allocation5 + $0x98] sm:$0xff]   ;;  %v1290_v19 = vld [vmem:[#allocation5 + $0xa0] sm:$0xff]   ;;  %v1293_v22 = vld [vmem:[#allocation5 + $0x28] sm:$0xff]   ;;  %p1455_p8 = pnand %p1454_p7, %p1448_p4 }
  0x51   :  { %1141 = vmatpush3.bf16.msra.mxu1 %v1278_v7  ;;  %1120 = vmatprep.subr.bf16.mxu0 %v1279_v8  ;;  %v1294_v23 = vld [vmem:[#allocation5 + $0xa8] sm:$0xff]   ;;  %v1295_v24 = vld [vmem:[#allocation5 + $0x70] sm:$0xff]   ;;  %v1299_v28 = vld [vmem:[#allocation5 + $0x78] sm:$0xff]  }
  0x52   :  { %1142 = vmatprep.subr.bf16.mxu1 %v1280_v9  ;;  %v1296_v25 = vld [vmem:[#allocation5 + $0xf0] sm:$0xff]   ;;  %v1300_v29 = vld [vmem:[#allocation5 + $0xf8] sm:$0xff]   ;;  %v78_v32 = vld [vmem:[#allocation2] sm:$0xff] }
  0x53   :  { %v1297_v26 = vld [vmem:[#allocation5 + $0x30] sm:$0xff]   ;;  %v1301_v30 = vld [vmem:[#allocation5 + $0x38] sm:$0xff]   ;;  %v79_v33 = vld [vmem:[#allocation2 + $0x8] sm:$0xff]  ;;  %v1027_v34 = vcombine.low %v78_v32, %v78_v32  ;;  %v1028_v35 = vcombine.high %v78_v32, %v78_v32 }
  0x54   :  { %1121 = vmatpush3.bf16.msra.mxu0 %v1281_v10  ;;  %v1298_v27 = vld [vmem:[#allocation5 + $0xb0] sm:$0xff]   ;;  %v1302_v31 = vld [vmem:[#allocation5 + $0xb8] sm:$0xff]   ;;  %v1029_v36 = vcombine.low %v79_v33, %v79_v33  ;;  %v1030_v37 = vcombine.high %v79_v33, %v79_v33  ;;  %v1307_v38 = vld [vmem:[#allocation5 + $0x140] sm:$0xff]  }
  0x55   :  { %1143 = vmatpush3.bf16.msra.mxu1 %v1282_v11  ;;  %1122 = vmatprep.subr.bf16.mxu0 %v1283_v12  ;;  %v1308_v39 = vld [vmem:[#allocation5 + $0x1c0] sm:$0xff]   ;;  %v1311_v42 = vld [vmem:[#allocation5 + $0x148] sm:$0xff]   ;;  %v1315_v46 = vld [vmem:[#allocation5 + $0x150] sm:$0xff]  }
  0x56   :  { %1144 = vmatprep.subr.bf16.mxu1 %v1284_v13  ;;  %661 = vmatprep.mubr.bf16.mxu0 %v1028_v35  ;;  %v1309_v40 = vld [vmem:[#allocation5 + $0x100] sm:$0xff]   ;;  %v1312_v43 = vld [vmem:[#allocation5 + $0x1c8] sm:$0xff]   ;;  %v1316_v47 = vld [vmem:[#allocation5 + $0x1d0] sm:$0xff]   ;;  %v1483_v13 = vmov 0.0  }
  0x57   :  { %701 = vmatprep.mubr.bf16.mxu1 %v1030_v37  ;;  %v1310_v41 = vld [vmem:[#allocation5 + $0x180] sm:$0xff]   ;;  %v1313_v44 = vld [vmem:[#allocation5 + $0x108] sm:$0xff]   ;;  %v1317_v48 = vld [vmem:[#allocation5 + $0x110] sm:$0xff]  }
  0x58   :  { %1123 = vmatpush3.bf16.msra.mxu0 %v1285_v14  ;;  %v1314_v45 = vld [vmem:[#allocation5 + $0x188] sm:$0xff]   ;;  %v1318_v49 = vld [vmem:[#allocation5 + $0x190] sm:$0xff]   ;;  %v1319_v50 = vld [vmem:[#allocation5 + $0x158] sm:$0xff]  }
  0x59   :  { %1145 = vmatpush3.bf16.msra.mxu1 %v1286_v15  ;;  %1124 = vmatprep.subr.bf16.mxu0 %v1287_v16  ;;  %v1320_v51 = vld [vmem:[#allocation5 + $0x1d8] sm:$0xff]   ;;  %v1323_v54 = vld [vmem:[#allocation5 + $0x160] sm:$0xff]   ;;  %v1327_v58 = vld [vmem:[#allocation5 + $0x168] sm:$0xff]  }
  0x5a   :  { %1146 = vmatprep.subr.bf16.mxu1 %v1288_v17  ;;  %v1321_v52 = vld [vmem:[#allocation5 + $0x118] sm:$0xff]   ;;  %v1324_v55 = vld [vmem:[#allocation5 + $0x1e0] sm:$0xff]   ;;  %v1328_v59 = vld [vmem:[#allocation5 + $0x1e8] sm:$0xff]  }
  0x5b   :  { %v1322_v53 = vld [vmem:[#allocation5 + $0x198] sm:$0xff]   ;;  %v1325_v56 = vld [vmem:[#allocation5 + $0x120] sm:$0xff]   ;;  %v1329_v60 = vld [vmem:[#allocation5 + $0x128] sm:$0xff]  }
  0x5c   :  { %1125 = vmatpush3.bf16.msra.mxu0 %v1289_v18  ;;  %v1326_v57 = vld [vmem:[#allocation5 + $0x1a0] sm:$0xff]   ;;  %v1330_v61 = vld [vmem:[#allocation5 + $0x1a8] sm:$0xff]   ;;  %v1331_v62 = vld [vmem:[#allocation5 + $0x170] sm:$0xff]  }
  0x5d   :  { %1147 = vmatpush3.bf16.msra.mxu1 %v1290_v19  ;;  %1126 = vmatprep.subr.bf16.mxu0 %v1291_v20  ;;  %v1332_v63 = vld [vmem:[#allocation5 + $0x1f0] sm:$0xff]   ;;  %v1335_v2 = vld [vmem:[#allocation5 + $0x178] sm:$0xff]   ;;  %v1343_v12 = vld [vmem:[#allocation7] sm:$0xff]  }
  0x5e   :  { %1148 = vmatprep.subr.bf16.mxu1 %v1292_v21  ;;  %v1333_v0 = vld [vmem:[#allocation5 + $0x130] sm:$0xff]   ;;  %v1336_v3 = vld [vmem:[#allocation5 + $0x1f8] sm:$0xff]   ;;  %v1344_v14 = vld [vmem:[#allocation7 + $0x8] sm:$0xff]  }
  0x5f   :  { %v1334_v1 = vld [vmem:[#allocation5 + $0x1b0] sm:$0xff]   ;;  %v1337_v4 = vld [vmem:[#allocation5 + $0x138] sm:$0xff]   ;;  %v1347_v17 = vld [vmem:[#allocation7 + $0x20] sm:$0xff]  }
  0x60   :  { %1127 = vmatpush3.bf16.msra.mxu0 %v1293_v22  ;;  %v1338_v5 = vld [vmem:[#allocation5 + $0x1b8] sm:$0xff]   ;;  %v80_v6 = vld [vmem:[#allocation2 + $0x10] sm:$0xff]  ;;  %v1348_v18 = vld [vmem:[#allocation7 + $0x28] sm:$0xff]  }
  0x61   :  { %1149 = vmatpush3.bf16.msra.mxu1 %v1294_v23  ;;  %1128 = vmatprep.subr.bf16.mxu0 %v1295_v24  ;;  %v1031_v7 = vcombine.low %v80_v6, %v80_v6  ;;  %v1032_v8 = vcombine.high %v80_v6, %v80_v6  ;;  %v81_v9 = vld [vmem:[#allocation2 + $0x18] sm:$0xff]  ;;  %v1345_v15 = vld [vmem:[#allocation7 + $0x10] sm:$0xff]   ;;  %v1351_v21 = vld [vmem:[#allocation8] sm:$0xff]  }
  0x62   :  { %1150 = vmatprep.subr.bf16.mxu1 %v1296_v25  ;;  %v1033_v10 = vcombine.low %v81_v9, %v81_v9  ;;  %v1034_v11 = vcombine.high %v81_v9, %v81_v9  ;;  %v1346_v16 = vld [vmem:[#allocation7 + $0x18] sm:$0xff]   ;;  %v1349_v19 = vld [vmem:[#allocation7 + $0x30] sm:$0xff]   ;;  %v1352_v22 = vld [vmem:[#allocation8 + $0x8] sm:$0xff]  }
  0x63   :  { %v1350_v20 = vld [vmem:[#allocation7 + $0x38] sm:$0xff]   ;;  %v1353_v23 = vld [vmem:[#allocation8 + $0x10] sm:$0xff]   ;;  %v1355_v25 = vld [vmem:[#allocation8 + $0x20] sm:$0xff]  }
  0x64   :  { %1129 = vmatpush3.bf16.msra.mxu0 %v1297_v26  ;;  %v1354_v24 = vld [vmem:[#allocation8 + $0x18] sm:$0xff]   ;;  %v1356_v26 = vld [vmem:[#allocation8 + $0x28] sm:$0xff]  }
  0x65   :  { %1151 = vmatpush3.bf16.msra.mxu1 %v1298_v27  ;;  %1130 = vmatprep.subr.bf16.mxu0 %v1299_v28 }
  0x66   :  { %1152 = vmatprep.subr.bf16.mxu1 %v1300_v29  ;;  %v1026_v29 = vld [vmem:[%s1616_s2] ss:$0 sm:$0xff] }
  0x68   :  { %1131 = vmatpush3.bf16.msra.mxu0 %v1301_v30 }
  0x69   :  { %1153 = vmatpush3.bf16.msra.mxu1 %v1302_v31  ;;  %1160 = vmatprep.subr.bf16.mxu0 %v1307_v38 }
  0x6a   :  { %1182 = vmatprep.subr.bf16.mxu1 %v1308_v39 }
  0x6b   :  { %662 = vmatmul.mubr.bf16.vlgmr.msra.gmra.mrb[0].mxu0 %v1027_v34 }
  0x6c   :  { %702 = vmatmul.mubr.bf16.vlgmr.msra.gmra.mrb[0].mxu1 %v1029_v36  ;;  %1161 = vmatpush3.bf16.msra.mxu0 %v1309_v40 }
  0x6d   :  { %1183 = vmatpush3.bf16.msra.mxu1 %v1310_v41  ;;  %1162 = vmatprep.subr.bf16.mxu0 %v1311_v42 }
  0x6e   :  { %1184 = vmatprep.subr.bf16.mxu1 %v1312_v43  ;;  %741 = vmatprep.mubr.bf16.mxu0 %v1032_v8 }
  0x6f   :  { %781 = vmatprep.mubr.bf16.mxu1 %v1034_v11 }
  0x70   :  { %1163 = vmatpush3.bf16.msra.mxu0 %v1313_v44 }
  0x71   :  { %1185 = vmatpush3.bf16.msra.mxu1 %v1314_v45  ;;  %1164 = vmatprep.subr.bf16.mxu0 %v1315_v46 }
  0x72   :  { %1186 = vmatprep.subr.bf16.mxu1 %v1316_v47 }
  0x74   :  { %1165 = vmatpush3.bf16.msra.mxu0 %v1317_v48 }
  0x75   :  { %1187 = vmatpush3.bf16.msra.mxu1 %v1318_v49  ;;  %1166 = vmatprep.subr.bf16.mxu0 %v1319_v50 }
  0x76   :  { %1188 = vmatprep.subr.bf16.mxu1 %v1320_v51 }
  0x78   :  { %1167 = vmatpush3.bf16.msra.mxu0 %v1321_v52 }
  0x79   :  { %1189 = vmatpush3.bf16.msra.mxu1 %v1322_v53  ;;  %1168 = vmatprep.subr.bf16.mxu0 %v1323_v54  ;;  %v1357_v54 = vld [vmem:[#allocation8 + $0x30] sm:$0xff]  }
  0x7a   :  { %1190 = vmatprep.subr.bf16.mxu1 %v1324_v55  ;;  %v1358_v55 = vld [vmem:[#allocation8 + $0x38] sm:$0xff]  }
  0x7c   :  { %1169 = vmatpush3.bf16.msra.mxu0 %v1325_v56  ;;  %v1099_v56 = vld [vmem:[%s1618_s4] ss:$0 sm:$0xff] }
  0x7d   :  { %1191 = vmatpush3.bf16.msra.mxu1 %v1326_v57  ;;  %1170 = vmatprep.subr.bf16.mxu0 %v1327_v58 }
  0x7e   :  { %1192 = vmatprep.subr.bf16.mxu1 %v1328_v59 }
  0x80   :  { %1171 = vmatpush3.bf16.msra.mxu0 %v1329_v60 }
  0x81   :  { %1193 = vmatpush3.bf16.msra.mxu1 %v1330_v61  ;;  %1172 = vmatprep.subr.bf16.mxu0 %v1331_v62 }
  0x82   :  { %1194 = vmatprep.subr.bf16.mxu1 %v1332_v63 }
  0x84   :  { %1173 = vmatpush3.bf16.msra.mxu0 %v1333_v0 }
  0x85   :  { %1195 = vmatpush3.bf16.msra.mxu1 %v1334_v1  ;;  %1174 = vmatprep.subr.bf16.mxu0 %v1335_v2 }
  0x86   :  { %1196 = vmatprep.subr.bf16.mxu1 %v1336_v3 }
  0x88   :  { %1175 = vmatpush3.bf16.msra.mxu0 %v1337_v4 }
  0x89   :  { %1197 = vmatpush3.bf16.msra.mxu1 %v1338_v5  ;;  %1222 = vmatprep.subr.bf16.mxu0 %v1483_v13 }
  0x8a   :  { %1242 = vmatprep.subr.bf16.mxu1 %v1483_v13 }
  0x8b   :  { %742 = vmatmul.mubr.bf16.vlgmr.msra.gmra.mrb[4].mxu0 %v1031_v7 }
  0x8c   :  { %782 = vmatmul.mubr.bf16.vlgmr.msra.gmra.mrb[4].mxu1 %v1033_v10  ;;  %1223 = vmatpush3.bf16.msra.mxu0 %v1343_v12 }
  0x8d   :  { %1224 = vmatprep.subr.bf16.mxu0 %v1483_v13  ;;  %1238 = vmatprep.mubr.msk.bf16.mxu0 %vm1484_vm0, %v1483_v13 }
  0x8e   :  { %1258 = vmatprep.mubr.msk.bf16.mxu1 %vm1484_vm0, %v1483_v13  ;;  %1243 = vmatpush3.bf16.msra.mxu1 %v1351_v21 }
  0x8f   :  { %1244 = vmatprep.subr.bf16.mxu1 %v1483_v13 }
  0x90   :  { %1225 = vmatpush3.bf16.msra.mxu0 %v1344_v14 }
  0x91   :  { %1226 = vmatprep.subr.bf16.mxu0 %v1483_v13 }
  0x92   :  { %1245 = vmatpush3.bf16.msra.mxu1 %v1352_v22 }
  0x93   :  { %1246 = vmatprep.subr.bf16.mxu1 %v1483_v13 }
  0x94   :  { %1227 = vmatpush3.bf16.msra.mxu0 %v1345_v15 }
  0x95   :  { %1228 = vmatprep.subr.bf16.mxu0 %v1483_v13 }
  0x96   :  { %1247 = vmatpush3.bf16.msra.mxu1 %v1353_v23 }
  0x97   :  { %1248 = vmatprep.subr.bf16.mxu1 %v1483_v13 }
  0x98   :  { %1229 = vmatpush3.bf16.msra.mxu0 %v1346_v16 }
  0x99   :  { %1230 = vmatprep.subr.bf16.mxu0 %v1483_v13 }
  0x9a   :  { %1249 = vmatpush3.bf16.msra.mxu1 %v1354_v24 }
  0x9b   :  { %1250 = vmatprep.subr.bf16.mxu1 %v1483_v13 }
  0x9c   :  { %1231 = vmatpush3.bf16.msra.mxu0 %v1347_v17 }
  0x9d   :  { %1232 = vmatprep.subr.bf16.mxu0 %v1483_v13 }
  0x9e   :  { %1251 = vmatpush3.bf16.msra.mxu1 %v1355_v25 }
  0x9f   :  { %1252 = vmatprep.subr.bf16.mxu1 %v1483_v13 }
  0xa0   :  { %1233 = vmatpush3.bf16.msra.mxu0 %v1348_v18 }
  0xa1   :  { %1234 = vmatprep.subr.bf16.mxu0 %v1483_v13 }
  0xa2   :  { %1253 = vmatpush3.bf16.msra.mxu1 %v1356_v26 }
  0xa3   :  { %1254 = vmatprep.subr.bf16.mxu1 %v1483_v13 }
  0xa4   :  { %1235 = vmatpush3.bf16.msra.mxu0 %v1349_v19 }
  0xa5   :  { %1236 = vmatprep.subr.bf16.mxu0 %v1483_v13 }
  0xa6   :  { %1255 = vmatpush3.bf16.msra.mxu1 %v1357_v54 }
  0xa7   :  { %1256 = vmatprep.subr.bf16.mxu1 %v1483_v13 }
  0xa8   :  { %1237 = vmatpush3.bf16.msra.mxu0 %v1350_v20 }
  0xaa   :  { %1257 = vmatpush3.bf16.msra.mxu1 %v1358_v55 }
 0x13e   :  { %v1132_v27 = vpop.f32.mrb[0].mxu0 }
 0x13f   :  { %v1154_v28 = vpop.f32.mrb[0].mxu1  ;;  %v1133_v30 = vpop.f32.mrb[1].mxu0 }
 0x140   :  { %v1155_v31 = vpop.f32.mrb[1].mxu1  ;;  %v1134_v32 = vadd.f32 %v1133_v30, %v1132_v27  ;;  %v1135_v34 = vpop.f32.mrb[2].mxu0 }
 0x141   :  { %v1156_v33 = vadd.f32 %v1155_v31, %v1154_v28  ;;  %v1157_v35 = vpop.f32.mrb[2].mxu1  ;;  %v1136_v36 = vpop.f32.mrb[3].mxu0 }
 0x142   :  { %v1158_v37 = vpop.f32.mrb[3].mxu1  ;;  %v664_v38 = vadd.f32 %v1134_v32, %v1026_v29 }
 0x144   :  { %v704_v39 = vadd.f32 %v1156_v33, %v664_v38 }
 0x15e   :  { %v1176_v40 = vpop.f32.mrb[4].mxu0 }
 0x15f   :  { %v1198_v41 = vpop.f32.mrb[4].mxu1  ;;  %v1177_v42 = vpop.f32.mrb[5].mxu0 }
 0x160   :  { %v1199_v43 = vpop.f32.mrb[5].mxu1  ;;  %v1178_v44 = vadd.f32 %v1177_v42, %v1176_v40  ;;  %v1179_v46 = vpop.f32.mrb[6].mxu0 }
 0x161   :  { %v1200_v45 = vadd.f32 %v1199_v43, %v1198_v41  ;;  %v1201_v47 = vpop.f32.mrb[6].mxu1  ;;  %v1180_v48 = vpop.f32.mrb[7].mxu0 }
 0x162   :  { %v1202_v49 = vpop.f32.mrb[7].mxu1  ;;  %v744_v50 = vadd.f32 %v1178_v44, %v704_v39 }
 0x164   :  { %v784_v51 = vadd.f32 %v1200_v45, %v744_v50 }
 0x166   :  { %v789_v52 = vmax.f32 %v784_v51, 0.0 }
 0x168   :  { %v790_v53 = vpack.c.bf16 %v789_v52, %v789_v52 }
 0x16a   :  { %1239 = vmatmul.mubr.bf16.vlgmr.msra.gmra.mrb[8].mxu0 %v790_v53 }
 0x23d   :  { %v896_v57 = vpop.f32.mrb[8].mxu0 }
 0x23e   :  { %v897_v58 = vadd.f32 %v1099_v56, %v896_v57  ;;  %v1240_v59 = vpop.f32.mrb[9].mxu0 }
 0x23f   :  { %v899_v60 = vpop.f32.mrb[10].mxu0 }
 0x240   :  { %v902_v61 = vmax.f32 %v897_v58, 0.0  ;;  %v1241_v62 = vpop.f32.mrb[11].mxu0 }
 0x242   :  { %v903_v63 = vpack.c.bf16 %v902_v61, %v902_v61 }
 0x244   :  { %1259 = vmatmul.mubr.bf16.vlgmr.msra.gmra.mrb[8].mxu1 %v903_v63 }
 0x317   :  { %v1002_v0 = vpop.f32.mrb[8].mxu1 }
 0x318   :  { %1008 = vst [vmem:[#allocation10] sm:$0xff] %v1002_v0  ;;  %v1260_v1 = vpop.f32.mrb[9].mxu1 }
 0x319   :  { %v1005_v2 = vpop.f32.mrb[10].mxu1 }
 0x31a   :  { %1458 = shalt.err (!%p1455_p8)
}
 0x31b   :  { %s1459_s25 = scalar_lea.hbm %s1620_s6, 128 }
 0x31c   :  { %p1460_p9 = scmp.ne.s32.totalorder %s1620_s6, %s1459_s25  ;;  %p1463_p10 = scmp.lt.u32.totalorder %s1459_s25, %s1620_s6 }
 0x31e   :  { %p1465_p11 = pnand %p1463_p10, %p1460_p9 }
 0x320   :  { %1468 = shalt.err (!%p1465_p11)
}
 0x321   :  { %1018 = dma.vmem_to_hbm [thread:$0]  %s1016_s22, 128, %s1620_s6, [#allocation4]   ;;  %v1261_v3 = vpop.f32.mrb[11].mxu1 }
 0x322   :  { %1475 = dma.done.wait [#allocation4], 128  }
 0x323   :  { %1476 = vsyncadd [#allocation4], 4294967168 }
 0x324   :  { %1022 = vsyncpa [#allocation3], 1 }
 0x325   :  { %1023 = vsyncpa [#allocation6], 1 }
 0x326   :  { %1024 = vsyncpa [#allocation9], 1 }
 0x327   :  { %1025 = vsyncpa [#allocation4], 1 }

</bundles_post_ra>
